<compile_context>
chip_gen: v6e
topology: v6e:2x2x1
jax: 0.10.0
libtpu: 0.0.40
codegen_flags: <defaults>
</compile_context>

<pallas_src>
import math
import functools

import jax
import jax.numpy as jnp
from jax import lax
from jax.experimental import pallas as pl
from jax.experimental.pallas import tpu as pltpu


# ----------------------------------------------------------------------------
# Kernels
# ----------------------------------------------------------------------------
def _embeddings_kernel_acc(x_ref, w_ref, b_ref, o_ref, acc_ref, *, scale):
    """Non-f32 output: accumulate in an f32 VMEM scratch, cast at the end.

    x_ref  : (tm, tk)  tile of flattened input rows
    w_ref  : (tn, tk)  weight tile in PyTorch (out_features, in_features) layout
    b_ref  : (1,  tn)  bias slice
    o_ref  : (tm, tn)  output tile (resident across the K axis)
    acc_ref: (tm, tn)  f32 accumulator scratch
    """
    k = pl.program_id(2)

    @pl.when(k == 0)
    def _():
        acc_ref[...] = jnp.zeros_like(acc_ref)

    # x (tm, tk) contracted with w (tn, tk) over their last axes == x @ w.T,
    # handled natively by the MXU (no transpose op, f32 accumulation).
    acc_ref[...] += lax.dot_general(
        x_ref[...], w_ref[...],
        dimension_numbers=(((1,), (1,)), ((), ())),
        preferred_element_type=jnp.float32)

    @pl.when(k == pl.num_programs(2) - 1)
    def _():
        out = (acc_ref[...] + b_ref[...].astype(jnp.float32)) * scale
        o_ref[...] = out.astype(o_ref.dtype)


def _embeddings_kernel_f32(x_ref, w_ref, b_ref, o_ref, *, scale):
    """f32 output: accumulate directly into the resident output block."""
    k = pl.program_id(2)

    @pl.when(k == 0)
    def _():
        o_ref[...] = jnp.zeros_like(o_ref)

    o_ref[...] += lax.dot_general(
        x_ref[...], w_ref[...],
        dimension_numbers=(((1,), (1,)), ((), ())),
        preferred_element_type=jnp.float32)

    @pl.when(k == pl.num_programs(2) - 1)
    def _():
        o_ref[...] = (o_ref[...] + b_ref[...].astype(jnp.float32)) * scale


# ----------------------------------------------------------------------------
# Tiling helpers
# ----------------------------------------------------------------------------
def _round_up(n, m):
    return ((n + m - 1) // m) * m


def _sublane_pack(dtype):
    """Native sublane packing: 8 for f32, 16 for bf16, 32 for int8/fp8."""
    return max(8, 32 // jnp.dtype(dtype).itemsize)


def _pick_contract_tile(K, max_full=2048):
    """(tk, padded_K) for the contraction (vocab) axis.  Avoid padding."""
    if K <= max_full:
        return K, K                         # full-extent block is always legal
    for cand in range(2048, 255, -256):     # largest lane-aligned exact divisor
        if K % cand == 0:
            return cand, K
    for cand in range(2048, 127, -128):
        if K % cand == 0:
            return cand, K
    # Last resort: zero-pad K (zeros add nothing to the contraction).
    # TODO(synk): cache the padded weight outside the per-call path.
    tk = 1024
    return tk, _round_up(K, tk)


def _pick_out_tile(N, max_full=2048):
    """(tn, padded_N) for the output-feature (d_model) axis.  Avoid padding."""
    if N <= max_full:
        return N, N
    for cand in range(2048, 255, -256):
        if N % cand == 0:
            return cand, N
    for cand in range(2048, 127, -128):
        if N % cand == 0:
            return cand, N
    tn = 512
    return tn, _round_up(N, tn)


def _vmem_capacity_bytes():
    try:
        return int(pltpu.get_tpu_info().vmem_capacity_bytes)
    except Exception:
        return 64 * 1024 * 1024             # conservative: v7x per-TensorCore


# ----------------------------------------------------------------------------
# Wrapper
# ----------------------------------------------------------------------------
def embeddings_forward(x, weight, bias, *, out_dtype=None):
    """y = (x @ weight.T + bias) * sqrt(d_model)

    x:      (..., vocab)
    weight: (d_model, vocab)   -- PyTorch nn.Linear layout (not transposed)
    bias:   (d_model,)
    """
    *lead, vocab = x.shape
    d_model, vocab_w = weight.shape
    assert vocab_w == vocab, "weight in_features must match x's last dim"
    out_dtype = jnp.dtype(out_dtype or x.dtype)

    M = 1
    for d in lead:
        M *= d
    x2d = x.reshape(M, vocab)
    b2d = bias.reshape(1, d_model)

    # ---- tile selection ----------------------------------------------------
    pack = _sublane_pack(x.dtype)
    tm_target = 1024 if M >= 4096 else 512
    tm = min(tm_target, _round_up(M, pack))
    tk, Kp = _pick_contract_tile(vocab)
    tn, Np = _pick_out_tile(d_model)

    in_item = jnp.dtype(x.dtype).itemsize
    w_item = jnp.dtype(weight.dtype).itemsize
    out_item = out_dtype.itemsize
    use_scratch = out_dtype != jnp.dtype(jnp.float32)

    def vmem_est(tm_, tn_, tk_):
        e = 2 * (tm_ * tk_ * in_item + tn_ * tk_ * w_item
                 + tn_ * max(w_item, 4) + tm_ * tn_ * out_item)
        if use_scratch:
            e += tm_ * tn_ * 4
        return e

    # ---- shrink tiles until the double-buffered footprint fits VMEM --------
    vmem_cap = _vmem_capacity_bytes()
    budget = int(0.65 * vmem_cap)
    while vmem_est(tm, tn, tk) > budget:
        if tk % 256 == 0 and tk // 2 >= 256 and Kp % (tk // 2) == 0:
            tk //= 2                      # cheap: only adds K grid steps
        elif tn % 256 == 0 and tn // 2 >= 128 and Np % (tn // 2) == 0:
            tn //= 2
        elif tm % (2 * pack) == 0 and tm // 2 >= pack:
            tm //= 2
        else:
            break

    # ---- guarantee >=2 blocks on the parallel axes (v7x has 2 TCs) ---------
    if pl.cdiv(M, tm) * (Np // tn) == 1:
        if tn % 256 == 0:
            tn //= 2
        elif tm % (2 * pack) == 0 and tm // 2 >= pack:
            tm //= 2

    Mp = _round_up(M, tm)

    # ---- padding (activations are cheap; weight pad is last-resort only) ---
    if Mp != M or Kp != vocab:
        x2d = jnp.pad(x2d, ((0, Mp - M), (0, Kp - vocab)))
    w2d = weight
    if Np != d_model or Kp != vocab:
        # Materializes a full HBM copy of the largest tensor; only reached
        # when no lane-aligned divisor of vocab/d_model exists.
        # TODO(synk): cache the padded weight outside the per-call path.
        w2d = jnp.pad(weight, ((0, Np - d_model), (0, Kp - vocab)))
    if Np != d_model:
        b2d = jnp.pad(b2d, ((0, 0), (0, Np - d_model)))

    grid = (Mp // tm, Np // tn, Kp // tk)
    n_i, n_j, _ = grid

    # sqrt(d_model) is static -> bake it into the kernel as a constant.
    scale = float(math.sqrt(d_model))
    if use_scratch:
        kernel = functools.partial(_embeddings_kernel_acc, scale=scale)
        scratch_shapes = [pltpu.VMEM((tm, tn), jnp.float32)]
    else:
        kernel = functools.partial(_embeddings_kernel_f32, scale=scale)
        scratch_shapes = []

    # ---- VMEM limit: estimate + headroom, never exceeding the chip ---------
    est = vmem_est(tm, tn, tk)
    vmem_limit = int(min(max(est + (8 << 20), 32 << 20), int(0.85 * vmem_cap)))
    vmem_limit = max(vmem_limit, est + (2 << 20))

    # ---- cost estimate reflecting operand re-streaming ---------------------
    bytes_accessed = (w2d.size * w_item * n_i
                      + x2d.size * in_item * n_j
                      + b2d.size * b2d.dtype.itemsize * n_i
                      + Mp * Np * out_item)
    cost = pl.CostEstimate(
        flops=2 * M * vocab * d_model,
        transcendentals=0,
        bytes_accessed=int(bytes_accessed))

    out2d = pl.pallas_call(
        kernel,
        out_shape=jax.ShapeDtypeStruct((Mp, Np), out_dtype),
        grid_spec=pltpu.PrefetchScalarGridSpec(
            num_scalar_prefetch=0,
            grid=grid,
            in_specs=[
                pl.BlockSpec((tm, tk), lambda i, j, k: (i, k)),  # x rows tile
                pl.BlockSpec((tn, tk), lambda i, j, k: (j, k)),  # weight (out, in)
                pl.BlockSpec((1, tn),  lambda i, j, k: (0, j)),  # bias slice
            ],
            out_specs=pl.BlockSpec((tm, tn), lambda i, j, k: (i, j)),
            scratch_shapes=scratch_shapes,
        ),
        compiler_params=pltpu.CompilerParams(
            dimension_semantics=("parallel", "parallel", "arbitrary"),
            vmem_limit_bytes=vmem_limit),
        cost_estimate=cost,
    )(x2d, w2d, b2d)

    if Mp != M or Np != d_model:
        out2d = out2d[:M, :d_model]
    return out2d.reshape(*lead, d_model)


if __name__ == "__main__":
    # --- small toy check (shapes the module's forward implies) --------------
    batch, seq = 2, 8
    vocab, d_model = 32, 32

    key = jax.random.PRNGKey(0)
    kx, kw, kb = jax.random.split(key, 3)

    # Mimic nn.Linear init: uniform(-1/sqrt(in_features), 1/sqrt(in_features))
    bound = 1.0 / math.sqrt(vocab)
    weight = jax.random.uniform(kw, (d_model, vocab), jnp.float32, -bound, bound)
    bias = jax.random.uniform(kb, (d_model,), jnp.float32, -bound, bound)
    x = jax.random.normal(kx, (batch, seq, vocab), jnp.float32)

    y = jax.block_until_ready(embeddings_forward(x, weight, bias))
    y_ref = (x @ weight.T + bias) * math.sqrt(d_model)
    assert y.shape == (batch, seq, d_model)
    assert jnp.allclose(y, y_ref, atol=1e-5, rtol=1e-5), "mismatch vs reference (toy)"

    # --- K-tiled path: vocab > 2048, divisor search picks tk=1280 (2 steps) --
    b2, s2, v2, d2 = 2, 16, 2560, 256
    k2x, k2w, k2b = jax.random.split(jax.random.PRNGKey(1), 3)
    w2 = jax.random.normal(k2w, (d2, v2), jnp.float32) * 0.02
    bi2 = jax.random.normal(k2b, (d2,), jnp.float32) * 0.02
    x2 = jax.random.normal(k2x, (b2, s2, v2), jnp.float32)

    y2 = jax.block_until_ready(embeddings_forward(x2, w2, bi2))
    y2_ref = (jnp.einsum("bsv,dv->bsd", x2, w2,
                         precision=lax.Precision.HIGHEST) + bi2) * math.sqrt(d2)
    assert y2.shape == (b2, s2, d2)
    assert jnp.allclose(y2, y2_ref, atol=5e-4, rtol=5e-4), "mismatch vs reference (tiled)"

    # --- bf16-output path exercises the f32 VMEM-accumulator kernel variant --
    y3 = jax.block_until_ready(
        embeddings_forward(x2, w2, bi2, out_dtype=jnp.bfloat16))
    assert y3.dtype == jnp.bfloat16
    assert jnp.allclose(y3.astype(jnp.float32), y2_ref, atol=5e-2, rtol=2e-2), \
        "mismatch vs reference (bf16 out)"

    print("KERNEL_OK")
</pallas_src>

<mosaic_0001>
module attributes {stable_mosaic.version = 11 : i64} {
  func.func @_embeddings_kernel_f32(%arg0: i32, %arg1: i32, %arg2: i32, %arg3: memref<8x32xf32, #tpu.memory_space<vmem>>, %arg4: memref<32x32xf32, #tpu.memory_space<vmem>>, %arg5: memref<1x32xf32, #tpu.memory_space<vmem>>, %arg6: memref<8x32xf32, #tpu.memory_space<vmem>>) attributes {dimension_semantics = [#tpu.dimension_semantics<parallel>, #tpu.dimension_semantics<parallel>, #tpu.dimension_semantics<arbitrary>], iteration_bounds = array<i64: 2, 1, 1>, scalar_prefetch = 0 : i64, scratch_operands = 0 : i64, tpu.core_type = #tpu.core_type<tc>, window_params = [{transform_indices = @transform_0, window_bounds = array<i64: 8, 32>}, {transform_indices = @transform_1, window_bounds = array<i64: 32, 32>}, {transform_indices = @transform_2, window_bounds = array<i64: 1, 32>}, {transform_indices = @transform_3, window_bounds = array<i64: 8, 32>}]} {
    %c0_i32 = arith.constant 0 : i32
    %0 = arith.cmpi eq, %arg2, %c0_i32 : i32
    %1 = arith.extui %0 : i1 to i32
    %c0_i32_0 = arith.constant 0 : i32
    %2 = arith.cmpi ne, %1, %c0_i32_0 : i32
    scf.if %2 {
      %cst_10 = arith.constant 0.000000e+00 : f32
      %12 = vector.broadcast %cst_10 : f32 to vector<8x32xf32>
      %c0_11 = arith.constant 0 : index
      %c0_12 = arith.constant 0 : index
      %13 = vector.load %arg6[%c0_11, %c0_12] : memref<8x32xf32, #tpu.memory_space<vmem>>, vector<8x32xf32>
      tpu.vector_store %arg6[%c0_11, %c0_12], %12 {strides = array<i32>} : memref<8x32xf32, #tpu.memory_space<vmem>>, vector<8x32xf32>,
    } else {
    }
    %c0 = arith.constant 0 : index
    %c0_1 = arith.constant 0 : index
    %3 = vector.load %arg6[%c0, %c0_1] : memref<8x32xf32, #tpu.memory_space<vmem>>, vector<8x32xf32>
    %c0_2 = arith.constant 0 : index
    %c0_3 = arith.constant 0 : index
    %4 = vector.load %arg3[%c0_2, %c0_3] : memref<8x32xf32, #tpu.memory_space<vmem>>, vector<8x32xf32>
    %c0_4 = arith.constant 0 : index
    %c0_5 = arith.constant 0 : index
    %5 = vector.load %arg4[%c0_4, %c0_5] : memref<32x32xf32, #tpu.memory_space<vmem>>, vector<32x32xf32>
    %cst = arith.constant dense<0.000000e+00> : vector<8x32xf32>
    %6 = tpu.matmul %4, %5, %cst {dimension_numbers = #tpu.dot_dimension_numbers<[1], [1], [0], [0], [0, 0, 1, 0], [], []>} : vector<8x32xf32>, vector<32x32xf32>, vector<8x32xf32> -> vector<8x32xf32>
    %7 = arith.addf %3, %6 : vector<8x32xf32>
    %c0_6 = arith.constant 0 : index
    %c0_7 = arith.constant 0 : index
    %8 = vector.load %arg6[%c0_6, %c0_7] : memref<8x32xf32, #tpu.memory_space<vmem>>, vector<8x32xf32>
    tpu.vector_store %arg6[%c0_6, %c0_7], %7 {strides = array<i32>} : memref<8x32xf32, #tpu.memory_space<vmem>>, vector<8x32xf32>,
    %c0_i32_8 = arith.constant 0 : i32
    %9 = arith.cmpi eq, %arg2, %c0_i32_8 : i32
    %10 = arith.extui %9 : i1 to i32
    %c0_i32_9 = arith.constant 0 : i32
    %11 = arith.cmpi ne, %10, %c0_i32_9 : i32
    scf.if %11 {
      %c0_10 = arith.constant 0 : index
      %c0_11 = arith.constant 0 : index
      %12 = vector.load %arg6[%c0_10, %c0_11] : memref<8x32xf32, #tpu.memory_space<vmem>>, vector<8x32xf32>
      %c0_12 = arith.constant 0 : index
      %c0_13 = arith.constant 0 : index
      %13 = vector.load %arg5[%c0_12, %c0_13] : memref<1x32xf32, #tpu.memory_space<vmem>>, vector<1x32xf32>
      %14 = vector.broadcast %13 : vector<1x32xf32> to vector<8x32xf32>
      %15 = arith.addf %12, %14 : vector<8x32xf32>
      %cst_14 = arith.constant 5.65685415 : f32
      %16 = vector.broadcast %cst_14 : f32 to vector<8x32xf32>
      %17 = arith.mulf %15, %16 : vector<8x32xf32>
      %c0_15 = arith.constant 0 : index
      %c0_16 = arith.constant 0 : index
      %18 = vector.load %arg6[%c0_15, %c0_16] : memref<8x32xf32, #tpu.memory_space<vmem>>, vector<8x32xf32>
      tpu.vector_store %arg6[%c0_15, %c0_16], %17 {strides = array<i32>} : memref<8x32xf32, #tpu.memory_space<vmem>>, vector<8x32xf32>,
    } else {
    }
    return
  }
  func.func @transform_0(%arg0: i32, %arg1: i32, %arg2: i32) -> (i32, i32) {
    %c0_i32 = arith.constant 0 : i32
    return %arg0, %arg2 : i32, i32
  }
  func.func @transform_1(%arg0: i32, %arg1: i32, %arg2: i32) -> (i32, i32) {
    %c0_i32 = arith.constant 0 : i32
    return %arg1, %arg2 : i32, i32
  }
  func.func @transform_2(%arg0: i32, %arg1: i32, %arg2: i32) -> (i32, i32) {
    %c0_i32 = arith.constant 0 : i32
    %c0_i32_0 = arith.constant 0 : i32
    return %c0_i32, %arg1 : i32, i32
  }
  func.func @transform_3(%arg0: i32, %arg1: i32, %arg2: i32) -> (i32, i32) {
    %c0_i32 = arith.constant 0 : i32
    return %arg0, %arg1 : i32, i32
  }
}

</mosaic_0001>

<bundles_post_ra>
// kernel: tpu_custom_call.1
= control target key start
LH: loop header
LB: loop body
LE: loop exit
PB: predicated region body
PF: predicated region fallthrough
CT: control target
= control target key end

     0   :  { %8 = vsyncpa [#allocation3], 0  ;;  %s949_s0 = inlined_call_operand.hbm [shape: f32[16,32], index: 0, kind: input, shape index: {}]   ;;  %s950_s1 = inlined_call_operand.hbm [shape: f32[32,32], index: 1, kind: input, shape index: {}]   ;;  %s951_s2 = inlined_call_operand.vmem [shape: f32[1,32], index: 2, kind: input, shape index: {}]   ;;  %s952_s3 = inlined_call_operand.hbm [shape: f32[16,32], index: 3, kind: output, shape index: {}]  }
   0x1   :  { %10 = vsyncpa [#allocation3 + $0x1], 0 }
   0x2   :  { %11 = vsyncpa [#allocation6], 0 }
   0x3   :  { %12 = vsyncpa [#allocation4], 0 }
   0x4   :  { %14 = vsyncpa [#allocation4 + $0x1], 0  ;;  %s771_s12 = smov 0   ;;  %s773_s13 = smov 0  }
   0x5   :  { %s775_s14 = smov 0   ;;  %s777_s15 = smov 0  }
   0x6   :  { %s779_s16 = smov 0   ;;  %s781_s17 = smov 0  }
   0x7 LB: > { %s489_s18 = sadd.s32 4294967295, %s742_s17   ;;  %s490_s19 = sadd.s32 4294967294, %s742_s17   ;;  %s742_s17 = sphi %s781_s17, %s20_s17   ;;  %s738_s16 = sphi %s779_s16, %s970_s16   ;;  %s734_s15 = sphi %s777_s15, %s969_s15   ;;  %s730_s14 = sphi %s775_s14, %s968_s14   ;;  %s726_s13 = sphi %s773_s13, %s967_s13   ;;  %s722_s12 = sphi %s771_s12, %s966_s12  }
   0x8   : > { %p61_p0 = scmp.ne.s32.totalorder %s726_s13, %s722_s12  ;;  %p805_p1 = scmp.eq.s32.totalorder %s489_s18, 0 }
   0x9   : > { %p809_p2 = scmp.eq.s32.totalorder %s489_s18, 1  ;;  %p147_p3 = scmp.eq.s32.totalorder %s490_s19, 1 }
   0xa   : > { %p815_p4 = por %p805_p1, %p61_p0  ;;  %p491_p5 = scmp.ge.s32.totalorder %s742_s17, 1 }
   0xb   : > { %p820_p6 = por %p147_p3, %p61_p0  ;;  %p154_p7 = scmp.lt.s32.totalorder %s742_s17, 3 }
   0xc   : > { %s956_s22 = scalar_select %p815_p4, 1, 0 }
   0xd   : > { %s957_s23 = scalar_select %p820_p6, 1, 0 }
   0xe   : > { %p825_p8 = pnand %p491_p5, %p154_p7  ;;  %s744_s25 = smov [#allocation5]  }
   0xf   : > { %s170_s26 = sshll.u32 %s744_s25, 4  ;;  %s39_s28 = sadd.s32 1, %s738_s16  ;;  %s171_s26 = int_to_ptr.vmem [resolvable:$true] %s170_s26 }
  0x10   : > { %p535_p9 = pneg %p825_p8  ;;  %s615_s29 = scalar_lea.vmem %s171_s26, 512 }
  0x11   : > { %p616_p13 = scmp.ne.s32.totalorder %s171_s26, %s615_s29  ;;  %p623_p5 = scmp.lt.s32.totalorder %s171_s26, %s171_s26 }
  0x12   : > { %p834_p11 = pnand %p535_p9, %p805_p1  ;;  %p624_p7 = scmp.lt.s32.totalorder %s615_s29, %s615_s29 }
  0x14   : > { %p606_p12 = pneg %p834_p11  ;;  %p625_p6 = por %p624_p7, %p623_p5 }
  0x16   : > { %p618_p0 = pnand %p616_p13, %p606_p12 }
  0x18   : > { %p619_p3 = pneg %p618_p0 }
  0x1a   : > { %p626_p4 = pnand %p625_p6, %p619_p3 }
  0x1c   : > { %629 = shalt.err (!%p626_p4)
}
  0x1d   : > { %s745_s30 = smov 128   ;;  %s746_s4 = smov 8  }
  0x1e   : > { %538 = dma.hbm_to_vmem [thread:$0]  (!%p834_p11), %s950_s1, 512, %s171_s26, [#allocation6], %s745_s30, %s745_s30, %s746_s4  }
  0x1f   : > { %p41_p6 = scmp.ge.s32.totalorder %s39_s28, 2  ;;  %s48_s7 = sadd.s32 1, %s730_s14 }
  0x20   : > { %p55_p4 = scmp.ne.s32.totalorder %s730_s14, %s726_s13  ;;  %p56_p9 = scmp.eq.s32.totalorder %s742_s17, 0 }
  0x21   : > { %s972_s28 = smov (%p41_p6, %s39_s28), 0  ;;  %p548_p0 = scmp.lt.s32.totalorder %s742_s17, 2 }
  0x22   : > { %p852_p12 = por %p56_p9, %p55_p4  ;;  %p858_p13 = por %p809_p2, %p55_p4 }
  0x23   : > { %s43_s10 = ssub.s32 %s738_s16, %s972_s28  ;;  %s190_s11 = sand.u32 1, %s730_s14  }
  0x24   : > { %p46_p11 = scmp.eq.s32.totalorder %s43_s10, 0  ;;  %s495_s18 = sshll.u32 %s190_s11, 3 }
  0x25   : > { %s496_s25 = sshll.u32 %s738_s16, 7  ;;  %s194_s30 = scalar_lea.vmem [#allocation2], %s495_s18 }
  0x26   : > { %s867_s19 = scalar_select %p46_p11, %s730_s14, %s48_s7  }
  0x27   : > { %s200_s29 = scalar_lea.hbm %s949_s0, %s496_s25  ;;  %s202_s4 = sshll.u32 %s194_s30, 4  ;;  %s203_s4 = int_to_ptr.vmem [resolvable:$true] %s202_s4 }
  0x28   : > { %p875_p2 = pnand %p548_p0, %p852_p12  ;;  %s191_s5 = scalar_lea.sflag [#allocation3], %s190_s11 }
  0x29   : > { %s643_s6 = scalar_lea.vmem %s203_s4, 128  ;;  %s747_s7 = smov [#allocation2]  }
  0x2a   : > { %p632_p3 = pneg %p875_p2  ;;  %p644_p5 = scmp.ne.s32.totalorder %s203_s4, %s643_s6 }
  0x2b   : > { %s648_s10 = sshll.u32 %s747_s7, 4  ;;  %s649_s10 = int_to_ptr.vmem [resolvable:$false] %s648_s10 }
  0x2c   : > { %p646_p7 = pnand %p644_p5, %p632_p3  ;;  %s650_s25 = scalar_lea.vmem %s649_s10, 256 }
  0x2d   : > { %p651_p4 = scmp.lt.s32.totalorder %s203_s4, %s649_s10  ;;  %p652_p9 = scmp.lt.s32.totalorder %s650_s25, %s643_s6 }
  0x2e   : > { %p647_p6 = pneg %p646_p7 }
  0x2f   : > { %p653_p11 = por %p652_p9, %p651_p4 }
  0x31   : > { %p654_p10 = pnand %p653_p11, %p647_p6 }
  0x33   : > { %657 = shalt.err (!%p654_p10)
}
  0x34   : > { %542 = dma.hbm_to_vmem [thread:$0]  (!%p875_p2), %s200_s29, 128, %s203_s4, %s191_s5  }
  0x35   : > { %211 = sbr.rel (%p825_p8) target bundleno = 298 (0x12a), region = 32  ;;  %s886_s8 = sand.u32 (!%p825_p8), 1, %s726_s13  }
  0x36   : > { %s498_s11 = sshll.u32 (!%p825_p8), %s886_s8, 3  ;;  %s214_s18 = scalar_lea.sflag (!%p825_p8), [#allocation3], %s886_s8 }
  0x37   : > { %s217_s26 = scalar_lea.vmem (!%p825_p8), [#allocation2], %s498_s11  ;;  %p963_p12 = scmp.ne.s32.totalorder (!%p825_p8), %s956_s22, 0 }
  0x3a   : > { %709 = dma.done.wait (%p963_p12), %s214_s18, 128  }
  0x3b   : > { %711 = vsyncadd (%p963_p12), %s214_s18, 4294967168 }
  0x3c   : > { %713 = dma.done.wait (%p805_p1), [#allocation6], 512  }
  0x3d   : > { %715 = vsyncadd (%p805_p1), [#allocation6], 4294966784  ;;  %vm255_vm0 = vcmask 261120   ;;  %v748_v0 = vmov 0.0   ;;  %vm749_vm1 = vmmov 0   ;;  %s246_s24 = scalar_lea.vmem [#allocation7], %s498_s11 }
  0x3e   : > { %516 = vmatprep.subr.mxu0 %v748_v0  ;;  %524 = vmatprep.mubr.msk.f32.mxu0 %vm749_vm1, %v748_v0  ;;  %256 = vst.msk [vmem:[%s246_s24] sm:$0xff] %vm255_vm0, %v748_v0  ;;  %v262_v1 = vld [vmem:[#allocation5 + $0x18] sm:$0xff]  ;;  %v261_v2 = vld [vmem:[#allocation5 + $0x10] sm:$0xff]  ;;  %v260_v3 = vld [vmem:[#allocation5 + $0x8] sm:$0xff]  ;;  %s508_s27 = sshll.u32 %s734_s15, 7  ;;  %s380_s29 = sshll.u32 %s246_s24, 4  ;;  %s381_s29 = int_to_ptr.vmem [resolvable:$true] %s380_s29 }
  0x3f   : > { %517 = vmatpush3.xpose.msk.msra.mxu0 %vm255_vm0, %v262_v1  ;;  %v259_v4 = vld [vmem:[#allocation5] sm:$0xff]  ;;  %v258_v5 = vld [vmem:[%s217_s26] sm:$0xff]  ;;  %s378_s21 = scalar_lea.hbm %s952_s3, %s508_s27  ;;  %s366_s5 = scalar_lea.sflag [#allocation4], %s886_s8 }
  0x40   : > { %518 = vmatprep.subr.mxu0 %v748_v0  ;;  %v506_v10 = vld [vmem:[%s951_s2] ss:$0 sm:$0xff]  ;;  %s658_s6 = scalar_lea.vmem %s381_s29, 128  ;;  %s750_s7 = smov [#allocation7]  }
  0x41   : > { %p659_p1 = scmp.ne.s32.totalorder %s381_s29, %s658_s6  ;;  %s662_s10 = sshll.u32 %s750_s7, 4  ;;  %s663_s10 = int_to_ptr.vmem [resolvable:$false] %s662_s10 }
  0x42   : > { %s664_s15 = scalar_lea.vmem %s663_s10, 256  ;;  %p665_p0 = scmp.lt.s32.totalorder %s381_s29, %s663_s10 }
  0x43   : > { %519 = vmatpush3.xpose.msk.msra.mxu0 %vm255_vm0, %v261_v2  ;;  %p660_p8 = pnand %p659_p1, %p858_p13  ;;  %p666_p2 = scmp.lt.s32.totalorder %s664_s15, %s658_s6 }
  0x44   : > { %520 = vmatprep.subr.mxu0 %v748_v0 }
  0x45   : > { %v257_v6 = vld [vmem:[%s246_s24] sm:$0xff]  ;;  %p661_p10 = pneg %p660_p8  ;;  %p667_p3 = por %p666_p2, %p665_p0 }
  0x47   : > { %521 = vmatpush3.xpose.msk.msra.mxu0 %vm255_vm0, %v260_v3  ;;  %p668_p5 = pnand %p667_p3, %p661_p10 }
  0x48   : > { %522 = vmatprep.subr.mxu0 %v748_v0 }
  0x4b   : > { %523 = vmatpush3.xpose.msk.msra.mxu0 %vm255_vm0, %v259_v4 }
  0x4e   : > { %525 = vmatmul.mubr.msk.f32.vlgmr.msra.gmra.mxu0 %vm255_vm0, %v258_v5 }
 0x10e   : > { %v345_v7 = vpop.f32.mrf.mxu0 }
 0x10f   : > { %v349_v8 = vadd.f32 %v345_v7, %v257_v6 }
 0x110   : > { %v526_v9 = vpop.f32.mrf.mxu0 }
 0x111   : > { %350 = vst.msk [vmem:[%s246_s24] sm:$0xff] %vm255_vm0, %v349_v8 }
 0x118   : > { %v354_v11 = vld [vmem:[%s246_s24] sm:$0xff] }
 0x119   : > { %v362_v12 = vadd.f32 %v506_v10, %v354_v11 }
 0x11b   : > { %v363_v13 = vmul.f32 5.656854, %v362_v12 }
 0x11d   : > { %364 = vst.msk [vmem:[%s246_s24] sm:$0xff] %vm255_vm0, %v363_v13 }
 0x11e   : > { %671 = shalt.err (!%p668_p5)
}
 0x11f   : > { %s672_s25 = scalar_lea.hbm %s378_s21, 128  ;;  %s676_s18 = scalar_lea.hbm %s952_s3, 256 }
 0x120   : > { %p673_p7 = scmp.ne.s32.totalorder %s378_s21, %s672_s25  ;;  %p677_p9 = scmp.lt.s32.totalorder %s378_s21, %s952_s3 }
 0x121   : > { %p678_p11 = scmp.lt.s32.totalorder %s676_s18, %s672_s25 }
 0x122   : > { %p674_p6 = pnand %p673_p7, %p858_p13 }
 0x123   : > { %p679_p12 = por %p678_p11, %p677_p9 }
 0x124   : > { %p675_p4 = pneg %p674_p6 }
 0x126   : > { %p680_p1 = pnand %p679_p12, %p675_p4 }
 0x128   : > { %683 = shalt.err (!%p680_p1)
}
 0x129   : > { %533 = dma.vmem_to_hbm [thread:$0]  (%p858_p13), %s381_s29, 128, %s378_s21, %s366_s5  }
 0x12a PF: > { %s392_s20 = sand.u32 1, %s722_s12   ;;  %p964_p8 = scmp.ne.s32.totalorder %s957_s23, 0 }
 0x12b   : > { %p965_p10 = scmp.ge.s32.totalorder %s742_s17, 2  ;;  %s393_s22 = scalar_lea.sflag [#allocation4], %s392_s20 }
 0x12d   : > { %p544_p0 = pnand %p965_p10, %p964_p8 }
 0x12f   : > { %p545_p2 = pneg %p544_p0 }
 0x131   : > { %717 = dma.done.wait (%p545_p2), %s393_s22, 128  }
 0x132   : > { %719 = vsyncadd (%p545_p2), %s393_s22, 4294967168  ;;  %s20_s17 = sadd.s32 1, %s742_s17   ;;  %s966_s12 = smov %s726_s13 }
 0x133   : > { %p17_p3 = scmp.ge.s32.totalorder %s20_s17, 4   ;;  %s967_s13 = smov %s730_s14 }
 0x134   : > { %s968_s14 = smov %s867_s19  ;;  %s969_s15 = smov %s738_s16 }
 0x135   : > { %s970_s16 = smov %s972_s28  ;;  %19 = sbr.rel (!%p17_p3) target bundleno = 7 (0x7), region = 93 }
 0x13a   :  { %398 = vsyncpa [#allocation3], 1 }
 0x13b   :  { %400 = vsyncpa [#allocation3 + $0x1], 1 }
 0x13c   :  { %401 = vsyncpa [#allocation6], 1 }
 0x13d   :  { %402 = vsyncpa [#allocation4], 1 }
 0x13e   :  { %404 = vsyncpa [#allocation4 + $0x1], 1 }

</bundles_post_ra>
